<compile_context>
chip_gen: v5e
topology: v5e:2x2
jax: 0.10.0
libtpu: 0.0.40
codegen_flags: <defaults>
</compile_context>

<pallas_src>
import math

import jax
import jax.numpy as jnp
from jax.experimental import pallas as pl
from jax.experimental.pallas import tpu as pltpu


_SQRT_2_OVER_PI = math.sqrt(2.0 / math.pi)


def _gelu_tanh(x):
    # GELU(tanh approx), factored as x * (0.5 + 0.5*tanh(x*(c + c*0.044715*x^2)))
    # -> one fewer VPU multiply per element; tanh runs on the EUP slot.
    c = _SQRT_2_OVER_PI
    return x * (0.5 + 0.5 * jnp.tanh(x * (c + (c * 0.044715) * (x * x))))


def _round_up(n, m):
    return ((n + m - 1) // m) * m


def _cdiv(a, b):
    return (a + b - 1) // b


def _vmem_budget_bytes():
    """Generation-aware VMEM budget: ~3/4 of physical VMEM (≈48 MiB on v7x,
    ≈96 MiB on v5e/v6e), conservative 48 MiB fallback if the query fails."""
    try:
        cap = int(pltpu.get_tpu_info().vmem_capacity_bytes)
    except Exception:  # pragma: no cover - info query unavailable
        cap = 64 * 1024 * 1024
    return min((cap * 3) // 4, 112 * 1024 * 1024)


def _pick_th(H, th_req):
    """Pick a hidden-panel size TH (multiple of 256 unless it covers all of H)
    that minimizes padding: nh panels of TH with nh*TH >= H."""
    if th_req >= H:
        return H, 1, H
    nh = _cdiv(H, th_req)
    TH = _round_up(_cdiv(H, nh), 256)
    return TH, nh, nh * TH


# ----------------------------- kernel bodies ------------------------------- #

def mlp_kernel_resident(x_ref, wfc_ref, bfc_ref, wproj_ref, bproj_ref, o_ref):
    # Weights are VMEM-resident (constant index_map); one fused pass per M tile.
    xb = x_ref[...].astype(wfc_ref.dtype)
    h = jnp.dot(xb, wfc_ref[...], preferred_element_type=jnp.float32)
    h = _gelu_tanh(h + bfc_ref[...])                     # bias + GELU in f32
    y = jnp.dot(h.astype(wproj_ref.dtype), wproj_ref[...],
                preferred_element_type=jnp.float32)
    o_ref[...] = (y + bproj_ref[...]).astype(o_ref.dtype)


def mlp_kernel_stream(x_ref, wfc_ref, bfc_ref, wproj_ref, bproj_ref, o_ref,
                      acc_ref):
    # Hidden dim streamed in panels (grid axis 1, reduction, innermost).
    h_idx = pl.program_id(1)

    @pl.when(h_idx == 0)
    def _():
        acc_ref[...] = jnp.zeros_like(acc_ref)

    xb = x_ref[...].astype(wfc_ref.dtype)
    h = jnp.dot(xb, wfc_ref[...], preferred_element_type=jnp.float32)
    h = _gelu_tanh(h + bfc_ref[...])
    acc_ref[...] += jnp.dot(h.astype(wproj_ref.dtype), wproj_ref[...],
                            preferred_element_type=jnp.float32)

    @pl.when(h_idx == pl.num_programs(1) - 1)
    def _():
        o_ref[...] = (acc_ref[...] + bproj_ref[...]).astype(o_ref.dtype)


# ------------------------------- wrapper ------------------------------------ #

def mlp_pallas(x, w_fc, b_fc, w_proj, b_proj, *, tm=1024, th=2048,
               compute_dtype=jnp.bfloat16):
    """x: (B, T, C); w_fc: (C, 4C); b_fc: (4C,); w_proj: (4C, C); b_proj: (C,)."""
    B, T, C = x.shape
    H = w_fc.shape[1]
    M = B * T
    out_dtype = x.dtype
    x_isz = jnp.dtype(x.dtype).itemsize
    out_isz = jnp.dtype(out_dtype).itemsize
    c_isz = jnp.dtype(compute_dtype).itemsize

    vmem_budget = _vmem_budget_bytes()

    # ---- token (M) tile: large enough to be compute-bound vs weight traffic ----
    TM = min(tm, _round_up(M, 8))
    if _cdiv(M, TM) == 1 and M >= 512:
        # v7x megacore: a single M tile would idle one TensorCore -> split in two.
        TM = _round_up(_cdiv(M, 2), 256)

    # ---- resident-weight feasibility (shrinking TM if needed) ----
    def resident_vmem(tm_):
        return (2 * tm_ * C * x_isz            # x tile (double-buffered)
                + 2 * tm_ * C * out_isz        # out tile (double-buffered)
                + tm_ * H * 4 + tm_ * H * c_isz   # f32 hidden + bf16 cast
                + 2 * (C * H + H * C) * c_isz     # both weights (worst-case 2 bufs)
                + 2 * (H + C) * 4)                # biases

    use_resident = False
    tm_try = TM
    while True:
        if resident_vmem(tm_try) <= vmem_budget:
            use_resident, TM = True, tm_try
            break
        if tm_try <= 256:
            break
        tm_try = max(256, tm_try // 2)

    # ---- operands: x stays in its dtype (cast in-kernel), weights -> bf16 ----
    x2 = x.reshape(M, C)
    wfc = w_fc.astype(compute_dtype)
    wproj = w_proj.astype(compute_dtype)
    bfc2 = b_fc.astype(jnp.float32).reshape(1, H)
    bproj2 = b_proj.astype(jnp.float32).reshape(1, C)

    nm = _cdiv(M, TM)
    weight_bytes = (C * H + H * C) * c_isz

    if use_resident:
        grid = (nm,)
        in_specs = [
            pl.BlockSpec((TM, C), lambda i: (i, 0)),   # x tile (per M tile)
            pl.BlockSpec((C, H), lambda i: (0, 0)),    # w_fc  (VMEM-resident)
            pl.BlockSpec((1, H), lambda i: (0, 0)),    # b_fc  (resident)
            pl.BlockSpec((H, C), lambda i: (0, 0)),    # w_proj (VMEM-resident)
            pl.BlockSpec((1, C), lambda i: (0, 0)),    # b_proj (resident)
        ]
        out_specs = pl.BlockSpec((TM, C), lambda i: (i, 0))
        scratch_shapes = []
        kernel = mlp_kernel_resident
        dim_sem = ("parallel",)
        w_traffic = weight_bytes                       # weights fetched once
    else:
        # ---- stream H in panels with a resident f32 accumulator ----
        TH, nh, H_pad = _pick_th(H, min(th, H))

        def stream_vmem(tm_, th_):
            return (2 * tm_ * C * x_isz + 2 * tm_ * C * out_isz
                    + 2 * (C * th_ + th_ * C) * c_isz     # weight panels (2 bufs)
                    + 2 * (th_ + C) * 4                   # bias panels
                    + tm_ * C * 4                         # f32 accumulator
                    + tm_ * th_ * 4 + tm_ * th_ * c_isz)  # f32 hidden + bf16 cast

        while stream_vmem(TM, TH) > vmem_budget and (TM > 256 or TH > 256):
            if TH >= TM and TH > 256:
                TH, nh, H_pad = _pick_th(H, max(256, TH // 2))
            else:
                TM = max(256, TM // 2)
        nm = _cdiv(M, TM)

        if H_pad != H:  # zero-padded H panels contribute exactly zero
            wfc = jnp.pad(wfc, ((0, 0), (0, H_pad - H)))
            wproj = jnp.pad(wproj, ((0, H_pad - H), (0, 0)))
            bfc2 = jnp.pad(bfc2, ((0, 0), (0, H_pad - H)))

        grid = (nm, nh)
        in_specs = [
            pl.BlockSpec((TM, C), lambda i, h: (i, 0)),   # x tile
            pl.BlockSpec((C, TH), lambda i, h: (0, h)),   # w_fc H-panel
            pl.BlockSpec((1, TH), lambda i, h: (0, h)),   # b_fc H-panel
            pl.BlockSpec((TH, C), lambda i, h: (h, 0)),   # w_proj H-panel
            pl.BlockSpec((1, C), lambda i, h: (0, 0)),    # b_proj (resident)
        ]
        # Same output block for all h -> stays resident across the reduction.
        out_specs = pl.BlockSpec((TM, C), lambda i, h: (i, 0))
        scratch_shapes = [pltpu.VMEM((TM, C), jnp.float32)]
        kernel = mlp_kernel_stream
        dim_sem = ("parallel", "arbitrary")
        w_traffic = (C * H_pad + H_pad * C) * c_isz * nm  # re-streamed per M tile

    cost = pl.CostEstimate(
        flops=4 * M * C * H,                 # two (M,C,H) matmuls, 2*M*C*H each
        transcendentals=M * H,               # one tanh per hidden activation
        bytes_accessed=(M * C * x_isz + w_traffic + M * C * out_isz
                        + (H + C) * 4),
    )

    out = pl.pallas_call(
        kernel,
        out_shape=jax.ShapeDtypeStruct((M, C), out_dtype),
        grid_spec=pltpu.PrefetchScalarGridSpec(
            num_scalar_prefetch=0,
            grid=grid,
            in_specs=in_specs,
            out_specs=out_specs,
            scratch_shapes=scratch_shapes,
        ),
        compiler_params=pltpu.CompilerParams(
            dimension_semantics=dim_sem,
            vmem_limit_bytes=int(vmem_budget),
        ),
        cost_estimate=cost,
    )(x2, wfc, bfc2, wproj, bproj2)

    return out.reshape(B, T, C)


def mlp_reference(x, w_fc, b_fc, w_proj, b_proj, compute_dtype=jnp.bfloat16):
    # Same precision recipe as the kernel (bf16 matmul inputs, f32 accumulate).
    B, T, C = x.shape
    xc = x.reshape(-1, C).astype(compute_dtype)
    h = jnp.dot(xc, w_fc.astype(compute_dtype),
                preferred_element_type=jnp.float32) + b_fc.astype(jnp.float32)
    h = _gelu_tanh(h)
    y = jnp.dot(h.astype(compute_dtype), w_proj.astype(compute_dtype),
                preferred_element_type=jnp.float32) + b_proj.astype(jnp.float32)
    return y.reshape(B, T, C).astype(x.dtype)


if __name__ == "__main__":
    # Small GPT-like config: batch=2, seq=8, n_embd=32 -> hidden=128
    B, T, C = 2, 8, 32
    H = 4 * C

    key = jax.random.PRNGKey(0)
    kx, kwfc, kbfc, kwp, kbp = jax.random.split(key, 5)

    x = jax.random.normal(kx, (B, T, C), dtype=jnp.float32)
    # Deterministic init mimicking nn.Linear's uniform(-1/sqrt(fan_in), ...)
    w_fc = jax.random.uniform(kwfc, (C, H), jnp.float32,
                              -1.0 / math.sqrt(C), 1.0 / math.sqrt(C))
    b_fc = jax.random.uniform(kbfc, (H,), jnp.float32,
                              -1.0 / math.sqrt(C), 1.0 / math.sqrt(C))
    w_proj = jax.random.uniform(kwp, (H, C), jnp.float32,
                                -1.0 / math.sqrt(H), 1.0 / math.sqrt(H))
    b_proj = jax.random.uniform(kbp, (C,), jnp.float32,
                                -1.0 / math.sqrt(H), 1.0 / math.sqrt(H))

    out = mlp_pallas(x, w_fc, b_fc, w_proj, b_proj)
    jax.block_until_ready(out)

    ref = mlp_reference(x, w_fc, b_fc, w_proj, b_proj)
    assert out.shape == (B, T, C)
    assert jnp.allclose(out, ref, atol=1e-2, rtol=1e-2), "mismatch vs reference"

    print("KERNEL_OK")
</pallas_src>

<mosaic_0001>
module attributes {stable_mosaic.version = 11 : i64} {
  func.func @mlp_kernel_resident(%arg0: i32, %arg1: memref<16x32xf32, #tpu.memory_space<vmem>>, %arg2: memref<32x128xbf16, #tpu.memory_space<vmem>>, %arg3: memref<1x128xf32, #tpu.memory_space<vmem>>, %arg4: memref<128x32xbf16, #tpu.memory_space<vmem>>, %arg5: memref<1x32xf32, #tpu.memory_space<vmem>>, %arg6: memref<16x32xf32, #tpu.memory_space<vmem>>) attributes {dimension_semantics = [#tpu.dimension_semantics<parallel>], iteration_bounds = array<i64: 1>, scalar_prefetch = 0 : i64, scratch_operands = 0 : i64, tpu.core_type = #tpu.core_type<tc>, window_params = [{transform_indices = @transform_0, window_bounds = array<i64: 16, 32>}, {pipeline_mode = #tpu.pipeline_mode<synchronous>, transform_indices = @transform_1, window_bounds = array<i64: 32, 128>}, {pipeline_mode = #tpu.pipeline_mode<synchronous>, transform_indices = @transform_2, window_bounds = array<i64: 1, 128>}, {pipeline_mode = #tpu.pipeline_mode<synchronous>, transform_indices = @transform_3, window_bounds = array<i64: 128, 32>}, {pipeline_mode = #tpu.pipeline_mode<synchronous>, transform_indices = @transform_4, window_bounds = array<i64: 1, 32>}, {transform_indices = @transform_5, window_bounds = array<i64: 16, 32>}]} {
    %c0 = arith.constant 0 : index
    %c0_0 = arith.constant 0 : index
    %0 = vector.load %arg1[%c0, %c0_0] : memref<16x32xf32, #tpu.memory_space<vmem>>, vector<16x32xf32>
    %1 = arith.truncf %0 : vector<16x32xf32> to vector<16x32xbf16>
    %c0_1 = arith.constant 0 : index
    %c0_2 = arith.constant 0 : index
    %2 = vector.load %arg2[%c0_1, %c0_2] : memref<32x128xbf16, #tpu.memory_space<vmem>>, vector<32x128xbf16>
    %cst = arith.constant dense<0.000000e+00> : vector<16x128xf32>
    %3 = tpu.matmul %1, %2, %cst {dimension_numbers = #tpu.dot_dimension_numbers<[1], [0], [0], [1], [0, 0, 1, 1], [], []>} : vector<16x32xbf16>, vector<32x128xbf16>, vector<16x128xf32> -> vector<16x128xf32>
    %c0_3 = arith.constant 0 : index
    %c0_4 = arith.constant 0 : index
    %4 = vector.load %arg3[%c0_3, %c0_4] : memref<1x128xf32, #tpu.memory_space<vmem>>, vector<1x128xf32>
    %5 = vector.broadcast %4 : vector<1x128xf32> to vector<16x128xf32>
    %6 = arith.addf %3, %5 : vector<16x128xf32>
    %7 = arith.mulf %6, %6 : vector<16x128xf32>
    %cst_5 = arith.constant 0.0356774069 : f32
    %8 = vector.broadcast %cst_5 : f32 to vector<16x128xf32>
    %9 = arith.mulf %8, %7 : vector<16x128xf32>
    %cst_6 = arith.constant 0.797884583 : f32
    %10 = vector.broadcast %cst_6 : f32 to vector<16x128xf32>
    %11 = arith.addf %10, %9 : vector<16x128xf32>
    %12 = arith.mulf %6, %11 : vector<16x128xf32>
    %13 = math.tanh %12 : vector<16x128xf32>
    %cst_7 = arith.constant 5.000000e-01 : f32
    %14 = vector.broadcast %cst_7 : f32 to vector<16x128xf32>
    %15 = arith.mulf %14, %13 : vector<16x128xf32>
    %cst_8 = arith.constant 5.000000e-01 : f32
    %16 = vector.broadcast %cst_8 : f32 to vector<16x128xf32>
    %17 = arith.addf %16, %15 : vector<16x128xf32>
    %18 = arith.mulf %6, %17 : vector<16x128xf32>
    %19 = arith.truncf %18 : vector<16x128xf32> to vector<16x128xbf16>
    %c0_9 = arith.constant 0 : index
    %c0_10 = arith.constant 0 : index
    %20 = vector.load %arg4[%c0_9, %c0_10] : memref<128x32xbf16, #tpu.memory_space<vmem>>, vector<128x32xbf16>
    %cst_11 = arith.constant dense<0.000000e+00> : vector<16x32xf32>
    %21 = tpu.matmul %19, %20, %cst_11 {dimension_numbers = #tpu.dot_dimension_numbers<[1], [0], [0], [1], [0, 0, 1, 1], [], []>} : vector<16x128xbf16>, vector<128x32xbf16>, vector<16x32xf32> -> vector<16x32xf32>
    %c0_12 = arith.constant 0 : index
    %c0_13 = arith.constant 0 : index
    %22 = vector.load %arg5[%c0_12, %c0_13] : memref<1x32xf32, #tpu.memory_space<vmem>>, vector<1x32xf32>
    %23 = vector.broadcast %22 : vector<1x32xf32> to vector<16x32xf32>
    %24 = arith.addf %21, %23 : vector<16x32xf32>
    %c0_14 = arith.constant 0 : index
    %c0_15 = arith.constant 0 : index
    %25 = vector.load %arg6[%c0_14, %c0_15] : memref<16x32xf32, #tpu.memory_space<vmem>>, vector<16x32xf32>
    tpu.vector_store %arg6[%c0_14, %c0_15], %24 {strides = array<i32>} : memref<16x32xf32, #tpu.memory_space<vmem>>, vector<16x32xf32>,
    return
  }
  func.func @transform_0(%arg0: i32) -> (i32, i32) {
    %c0_i32 = arith.constant 0 : i32
    %c0_i32_0 = arith.constant 0 : i32
    return %arg0, %c0_i32 : i32, i32
  }
  func.func @transform_1(%arg0: i32) -> (i32, i32) {
    %c0_i32 = arith.constant 0 : i32
    %c0_i32_0 = arith.constant 0 : i32
    %c0_i32_1 = arith.constant 0 : i32
    return %c0_i32, %c0_i32_0 : i32, i32
  }
  func.func @transform_2(%arg0: i32) -> (i32, i32) {
    %c0_i32 = arith.constant 0 : i32
    %c0_i32_0 = arith.constant 0 : i32
    %c0_i32_1 = arith.constant 0 : i32
    return %c0_i32, %c0_i32_0 : i32, i32
  }
  func.func @transform_3(%arg0: i32) -> (i32, i32) {
    %c0_i32 = arith.constant 0 : i32
    %c0_i32_0 = arith.constant 0 : i32
    %c0_i32_1 = arith.constant 0 : i32
    return %c0_i32, %c0_i32_0 : i32, i32
  }
  func.func @transform_4(%arg0: i32) -> (i32, i32) {
    %c0_i32 = arith.constant 0 : i32
    %c0_i32_0 = arith.constant 0 : i32
    %c0_i32_1 = arith.constant 0 : i32
    return %c0_i32, %c0_i32_0 : i32, i32
  }
  func.func @transform_5(%arg0: i32) -> (i32, i32) {
    %c0_i32 = arith.constant 0 : i32
    %c0_i32_0 = arith.constant 0 : i32
    return %arg0, %c0_i32 : i32, i32
  }
}

</mosaic_0001>

<bundles_post_ra>
// kernel: tpu_custom_call.1
= control target key start
LH: loop header
LB: loop body
LE: loop exit
PB: predicated region body
PF: predicated region fallthrough
CT: control target
= control target key end

     0   :  { %s349_s0 = inlined_call_operand.vmem [shape: f32[16,32], index: 0, kind: input, shape index: {}]   ;;  %s350_s1 = inlined_call_operand.vmem [shape: bf16[32,128], index: 1, kind: input, shape index: {}]   ;;  %s351_s2 = inlined_call_operand.vmem [shape: f32[1,128], index: 2, kind: input, shape index: {}]   ;;  %s352_s3 = inlined_call_operand.vmem [shape: bf16[128,32], index: 3, kind: input, shape index: {}]   ;;  %s353_s4 = inlined_call_operand.vmem [shape: f32[1,32], index: 4, kind: input, shape index: {}]   ;;  %s354_s5 = inlined_call_operand.hbm [shape: f32[16,32], index: 5, kind: output, shape index: {}]  }
   0x1   :  { %v224_v0 = vld [vmem:[%s350_s1 + $0x8] sm:$0xff]  ;;  %v223_v1 = vld [vmem:[%s350_s1] sm:$0xff] }
   0x2   :  { %v22_v2 = vld [vmem:[%s349_s0] sm:$0xff]  ;;  %55 = vmatpush.bf16.msra.mxu0 %v224_v0  ;;  %v23_v3 = vld [vmem:[%s349_s0 + $0x8] sm:$0xff] }
   0x3   :  { %10 = vsyncpa [#allocation3], 0  ;;  %v24_v4 = vpack.c.bf16 %v23_v3, %v22_v2  ;;  %vm45_vm0 = vcmask 261120   ;;  %v232_v5 = vld [vmem:[%s352_s3 + $0x38] sm:$0xff]  ;;  %v231_v6 = vld [vmem:[%s352_s3 + $0x30] sm:$0xff]  ;;  %s268_s17 = smov [#allocation2]  }
   0x4   :  { %148 = vmatpush.bf16.msra.mxu1 %v232_v5  ;;  %v230_v7 = vld [vmem:[%s352_s3 + $0x28] sm:$0xff]  ;;  %v229_v8 = vld [vmem:[%s352_s3 + $0x20] sm:$0xff]  ;;  %v228_v9 = vld [vmem:[%s352_s3 + $0x18] sm:$0xff]  ;;  %s168_s18 = sshll.u32 %s268_s17, 4  ;;  %s170_s21 = sshll.u32 %s354_s5, 4  ;;  %s169_s18 = int_to_ptr.vmem [resolvable:$true] %s168_s18  ;;  %s171_s21 = int_to_ptr.hbm [resolvable:$true] %s170_s21 }
   0x5   :  { %v227_v10 = vld [vmem:[%s352_s3 + $0x10] sm:$0xff]  ;;  %v226_v11 = vld [vmem:[%s352_s3 + $0x8] sm:$0xff]  ;;  %v225_v12 = vld [vmem:[%s352_s3] sm:$0xff]  ;;  %s269_s22 = smov 128   ;;  %s270_s23 = smov 8  }
   0x6   :  { %56 = vmatpush.bf16.msra.mxu0 %v223_v1  ;;  %v236_v13 = vld [vmem:[%s351_s2] ss:$0 sm:$0xff] }
   0x7   :  { %v237_v35 = vld [vmem:[%s353_s4] ss:$0 sm:$0xff] }
   0x8   :  { %149 = vmatpush.bf16.msra.mxu1 %v231_v6 }
   0x9   :  { %190 = vmatmul.msk.bf16.vlgmr.msra.gmra.mxu0 %vm45_vm0, %v24_v4 }
   0xc   :  { %150 = vmatpush.bf16.msra.mxu1 %v230_v7 }
  0x10   :  { %151 = vmatpush.bf16.msra.mxu1 %v229_v8 }
  0x14   :  { %152 = vmatpush.bf16.msra.mxu1 %v228_v9 }
  0x18   :  { %153 = vmatpush.bf16.msra.mxu1 %v227_v10 }
  0x1c   :  { %154 = vmatpush.bf16.msra.mxu1 %v226_v11 }
  0x20   :  { %155 = vmatpush.bf16.msra.mxu1 %v225_v12 }
  0x86   :  { %v58_v14 = vpop.f32.mrf.mxu0 }
  0x87   :  { %v59_v15 = vadd.f32 %v236_v13, %v58_v14 }
  0x89   :  { %v63_v16 = vmul.f32 %v59_v15, %v59_v15 }
  0x8b   :  { %v65_v17 = vmul.f32 0.035677407, %v63_v16 }
  0x8d   :  { %v67_v18 = vadd.f32 0.7978846, %v65_v17 }
  0x8e   :  { %v60_v19 = vpop.f32.mrf.mxu0 }
  0x8f   :  { %v69_v20 = vmul.f32 %v67_v18, %v59_v15  ;;  %v61_v21 = vadd.f32 %v236_v13, %v60_v19 }
  0x91   :  { %v64_v22 = vmul.f32 %v61_v21, %v61_v21  ;;  %238 = vtanh.f32 %v69_v20 }
  0x93   :  { %v66_v23 = vmul.f32 0.035677407, %v64_v22 }
  0x95   :  { %v68_v24 = vadd.f32 0.7978846, %v66_v23 }
  0x97   :  { %v70_v25 = vmul.f32 %v68_v24, %v61_v21  ;;  %v239_v26 = vpop.eup %238 }
  0x98   :  { %v73_v27 = vmul.f32 0.5, %v239_v26 }
  0x99   :  { %240 = vtanh.f32 %v70_v25 }
  0x9a   :  { %v75_v30 = vadd.f32 0.5, %v73_v27 }
  0x9c   :  { %v77_v32 = vmul.f32 %v75_v30, %v59_v15 }
  0x9f   :  { %v241_v28 = vpop.eup %240 }
  0xa0   :  { %v74_v29 = vmul.f32 0.5, %v241_v28 }
  0xa2   :  { %v76_v31 = vadd.f32 0.5, %v74_v29 }
  0xa4   :  { %v78_v33 = vmul.f32 %v76_v31, %v61_v21 }
  0xa6   :  { %v79_v34 = vpack.c.bf16 %v78_v33, %v77_v32 }
  0xa8   :  { %156 = vmatmul.bf16.vlgmr.msra.gmra.mxu1 %v79_v34 }
 0x125   :  { %v157_v36 = vpop.f32.mrf.mxu1 }
 0x126   :  { %v158_v37 = vadd.f32 %v237_v35, %v157_v36 }
 0x128   :  { %162 = vst.msk [vmem:[#allocation2] sm:$0xff] %vm45_vm0, %v158_v37 }
 0x12d   :  { %v159_v38 = vpop.f32.mrf.mxu1 }
 0x12e   :  { %v160_v39 = vadd.f32 %v237_v35, %v159_v38 }
 0x130   :  { %163 = vst.msk [vmem:[#allocation2 + $0x8] sm:$0xff] %vm45_vm0, %v160_v39 }
 0x131   :  { %176 = dma.vmem_to_hbm [thread:$0]  %s169_s18, 256, %s171_s21, [#allocation3], %s269_s22, %s269_s22, %s270_s23  }
 0x132   :  { %266 = dma.done.wait [#allocation3], 256  }
 0x133   :  { %267 = vsyncadd [#allocation3], 4294967040 }
 0x134   :  { %181 = vsyncpa [#allocation3], 1 }

</bundles_post_ra>
